<compile_context>
chip_gen: v7x
topology: tpu7x:2x2x1
jax: 0.10.0
libtpu: 0.0.40
codegen_flags: <defaults>
</compile_context>

<pallas_src>
import jax
import jax.numpy as jnp
from jax.experimental import pallas as pl
from jax.experimental.pallas import tpu as pltpu


def _round_up(x, m):
    return (x + m - 1) // m * m


# ----------------------------------------------------------------------------- kernel ----

def _make_kernel(fc1, fc2):
    def critic_kernel(s_ref, a_ref, w1s_ref, w1a_ref, w2_ref, pp_ref, q_ref):
        s = s_ref[...]                       # [input_dims, TB] f32 (batch on lanes)
        a = a_ref[...]                       # [n_actions, TB] f32
        pp = pp_ref[...]                     # [P, 4] packed f32 params
        b1 = pp[:fc1, 0:1]                   # [fc1, 1]
        b2 = pp[:fc2, 1:2]                   # [fc2, 1]
        w3 = pp[:fc2, 2:3]                   # [fc2, 1]   (q-head weight as a column)
        b3 = pp[0:1, 3:4]                    # [1, 1]

        # fc1 on cat(state, action):  h1^T = W1_s @ s^T + W1_a @ a^T + b1
        h1 = (jnp.dot(w1s_ref[...], s, preferred_element_type=jnp.float32)
              + jnp.dot(w1a_ref[...], a, preferred_element_type=jnp.float32)
              + b1)
        h1 = jnp.maximum(h1, 0.0)            # ReLU (VPU)

        # fc2:  h2^T = W2 @ h1^T + b2
        h2 = jnp.dot(w2_ref[...], h1, preferred_element_type=jnp.float32) + b2
        h2 = jnp.maximum(h2, 0.0)

        # q head (out_features == 1): VPU multiply + sublane reduce keeps the MXU out of a
        # 1-row matmul and leaves the output lane-dense: q^T = [1, TB].
        q_ref[...] = jnp.sum(h2 * w3, axis=0, keepdims=True) + b3

    return critic_kernel


# ------------------------------------------------------------------------- tiling / vmem --

_MAX_TILE = 1024  # lanes per grid step; per-step VMEM stays at a few MiB even at fc=512


def _batch_tile(B, cap=_MAX_TILE):
    if B <= 256:
        return B                              # single step; block dim == array dim is legal
    # >= 2 steps so both v7x TensorCores get work; tile kept a multiple of 128 lanes.
    return min(cap, _round_up(-(-B // 2), 128))


def _padded_bytes(rows, cols, itemsize=4):
    # (8, 128) layout padding for a VMEM tile.
    return _round_up(max(rows, 1), 8) * _round_up(max(cols, 1), 128) * itemsize


def _vmem_limit_bytes(TB, input_dims, n_actions, fc1, fc2, P):
    io = 2 * (_padded_bytes(input_dims, TB)            # double-buffered state^T blocks
              + _padded_bytes(n_actions, TB)           # double-buffered action^T blocks
              + _padded_bytes(1, TB))                  # double-buffered q^T blocks
    resident = 2 * (_padded_bytes(fc1, input_dims)     # W1_s
                    + _padded_bytes(fc1, n_actions)    # W1_a
                    + _padded_bytes(fc2, fc1)          # W2
                    + _padded_bytes(P, 4))             # packed b1|b2|w3|b3
    live = _padded_bytes(fc1, TB) + _padded_bytes(fc2, TB)   # h1^T / h2^T intermediates
    est = io + resident + live
    # 2x headroom for compiler temporaries; clamp under v7x's 64 MiB physical VMEM.
    return int(min(48 * 2 ** 20, max(16 * 2 ** 20, 2 * est)))


# ----------------------------------------------------------------------------- wrappers --

def critic_ref(state, action, params):
    """Pure-JAX reference / tiny-batch fallback (same math as the PyTorch forward)."""
    w1s, w1a, w2, pp = params
    fc1, fc2 = w1s.shape[0], w2.shape[0]
    b1 = pp[:fc1, 0]
    b2 = pp[:fc2, 1]
    w3 = pp[:fc2, 2]
    b3 = pp[0, 3]
    h = jnp.maximum(state @ w1s.T + action @ w1a.T + b1, 0.0)   # == cat(s, a) @ W1^T + b1
    h = jnp.maximum(h @ w2.T + b2, 0.0)
    return (h @ w3 + b3)[:, None]


def _critic_forward_pallas(state, action, params):
    w1s, w1a, w2, pp = params
    B, input_dims = state.shape
    n_actions = action.shape[1]
    fc1, fc2 = w1s.shape[0], w2.shape[0]
    P = pp.shape[0]

    # Layout plumbing: put the batch axis on the 128-lane axis (lane-dense DMAs in & out).
    s_t = state.T                              # [input_dims, B]
    a_t = action.T                             # [n_actions, B]

    TB = _batch_tile(B)
    grid = (pl.cdiv(B, TB),)

    def batch_spec(rows):
        return pl.BlockSpec((rows, TB), lambda i: (0, i))

    def resident_spec(shape):
        # whole-array block, same block every grid step -> DMA'd once, stays VMEM-resident.
        return pl.BlockSpec(shape, lambda i: (0, 0))

    q_t = pl.pallas_call(
        _make_kernel(fc1, fc2),
        out_shape=jax.ShapeDtypeStruct((1, B), jnp.float32),
        grid=grid,
        in_specs=[
            batch_spec(input_dims),            # state^T
            batch_spec(n_actions),             # action^T
            resident_spec(w1s.shape),          # W1_s  [fc1, input_dims]
            resident_spec(w1a.shape),          # W1_a  [fc1, n_actions]
            resident_spec(w2.shape),           # W2    [fc2, fc1]
            resident_spec(pp.shape),           # packed b1 | b2 | w3 | b3   [P, 4]
        ],
        out_specs=batch_spec(1),               # q^T  [1, B], lane-dense
        compiler_params=pltpu.CompilerParams(
            dimension_semantics=("parallel",),   # lets v7x shard the batch axis over 2 TCs
            vmem_limit_bytes=_vmem_limit_bytes(TB, input_dims, n_actions, fc1, fc2, P),
        ),
    )(s_t, a_t, w1s, w1a, w2, pp)

    return q_t.reshape(B, 1)                   # (1, B) -> (B, 1): metadata-only


def critic_forward(state, action, params, use_pallas=None):
    """state: [B, input_dims], action: [B, n_actions] -> q: [B, 1] (float32)."""
    B = state.shape[0]
    if use_pallas is None:
        # At tiny batches the fixed pallas_call launch + param DMAs exceed the whole MLP.
        use_pallas = B >= 64
    if not use_pallas:
        return critic_ref(state, action, params)
    return _critic_forward_pallas(state, action, params)


# --------------------------------------------------------------------------------- init --

def init_params(key, input_dims, n_actions, fc1_dims, fc2_dims):
    """Deterministic init mirroring nn.Linear defaults: U(-1/sqrt(fan_in), +1/sqrt(fan_in)).

    Weights are stored in the PyTorch [out_features, in_features] layout, which is exactly
    what the transposed kernel consumes.  W1 is split column-wise into state/action halves
    so state @ W1_s^T + action @ W1_a^T == cat(state, action) @ W1^T exactly.  The small
    params (b1, b2, q-head weight row, b3) are packed into one [P, 4] f32 array so the
    kernel sees a single resident side-input instead of five tiny ones.
    """
    in0 = input_dims + n_actions
    k = jax.random.split(key, 6)

    def uniform_linear(kw, kb, fan_in, fan_out):
        bound = 1.0 / float(fan_in) ** 0.5
        w = jax.random.uniform(kw, (fan_out, fan_in), jnp.float32, -bound, bound)
        b = jax.random.uniform(kb, (fan_out,), jnp.float32, -bound, bound)
        return w, b

    w1, b1 = uniform_linear(k[0], k[1], in0, fc1_dims)      # [fc1, in0]
    w2, b2 = uniform_linear(k[2], k[3], fc1_dims, fc2_dims)  # [fc2, fc1]
    w3, b3 = uniform_linear(k[4], k[5], fc2_dims, 1)         # [1, fc2]

    w1s = w1[:, :input_dims]              # [fc1, input_dims]
    w1a = w1[:, input_dims:]              # [fc1, n_actions]

    P = max(fc1_dims, fc2_dims)
    pp = jnp.zeros((P, 4), jnp.float32)
    pp = pp.at[:fc1_dims, 0].set(b1)
    pp = pp.at[:fc2_dims, 1].set(b2)
    pp = pp.at[:fc2_dims, 2].set(w3[0])
    pp = pp.at[0, 3].set(b3[0])

    return (w1s, w1a, w2, pp)


# --------------------------------------------------------------------------------- main --

if __name__ == "__main__":
    input_dims = 16
    n_actions = 4
    fc1_dims = 32   # config.layer1_size (synthetic)
    fc2_dims = 32   # config.layer2_size (synthetic)

    key = jax.random.PRNGKey(0)
    kp, ks, ka, ks2, ka2 = jax.random.split(key, 5)
    params = init_params(kp, input_dims, n_actions, fc1_dims, fc2_dims)

    # 1) Small-batch smoke test (B=2): force the Pallas path so the kernel itself runs.
    B = 2
    state = jax.random.normal(ks, (B, input_dims), jnp.float32)
    action = jax.random.normal(ka, (B, n_actions), jnp.float32)
    q = jax.block_until_ready(critic_forward(state, action, params, use_pallas=True))
    ref = critic_ref(state, action, params)
    assert q.shape == (B, 1)
    assert jnp.allclose(q, ref, atol=2e-2, rtol=2e-2), (q, ref)

    # 2) Larger batch: exercises the batch-tiled grid (2 steps, including a partial block).
    B2 = 322
    state2 = jax.random.normal(ks2, (B2, input_dims), jnp.float32)
    action2 = jax.random.normal(ka2, (B2, n_actions), jnp.float32)
    q2 = jax.block_until_ready(critic_forward(state2, action2, params, use_pallas=True))
    ref2 = critic_ref(state2, action2, params)
    assert q2.shape == (B2, 1)
    assert jnp.allclose(q2, ref2, atol=2e-2, rtol=2e-2), (q2, ref2)

    print("KERNEL_OK")
</pallas_src>

<mosaic_0001>
module attributes {stable_mosaic.version = 11 : i64} {
  func.func @critic_kernel(%arg0: i32, %arg1: memref<16x2xf32, #tpu.memory_space<vmem>>, %arg2: memref<4x2xf32, #tpu.memory_space<vmem>>, %arg3: memref<32x16xf32, #tpu.memory_space<vmem>>, %arg4: memref<32x4xf32, #tpu.memory_space<vmem>>, %arg5: memref<32x32xf32, #tpu.memory_space<vmem>>, %arg6: memref<32x4xf32, #tpu.memory_space<vmem>>, %arg7: memref<1x2xf32, #tpu.memory_space<vmem>>) attributes {dimension_semantics = [#tpu.dimension_semantics<parallel>], iteration_bounds = array<i64: 1>, scalar_prefetch = 0 : i64, scratch_operands = 0 : i64, tpu.core_type = #tpu.core_type<tc>, window_params = [{transform_indices = @transform_0, window_bounds = array<i64: 16, 2>}, {transform_indices = @transform_1, window_bounds = array<i64: 4, 2>}, {pipeline_mode = #tpu.pipeline_mode<synchronous>, transform_indices = @transform_2, window_bounds = array<i64: 32, 16>}, {pipeline_mode = #tpu.pipeline_mode<synchronous>, transform_indices = @transform_3, window_bounds = array<i64: 32, 4>}, {pipeline_mode = #tpu.pipeline_mode<synchronous>, transform_indices = @transform_4, window_bounds = array<i64: 32, 32>}, {pipeline_mode = #tpu.pipeline_mode<synchronous>, transform_indices = @transform_5, window_bounds = array<i64: 32, 4>}, {transform_indices = @transform_6, window_bounds = array<i64: 1, 2>}]} {
    %c0 = arith.constant 0 : index
    %c0_0 = arith.constant 0 : index
    %0 = vector.load %arg1[%c0, %c0_0] : memref<16x2xf32, #tpu.memory_space<vmem>>, vector<16x2xf32>
    %c0_1 = arith.constant 0 : index
    %c0_2 = arith.constant 0 : index
    %1 = vector.load %arg2[%c0_1, %c0_2] : memref<4x2xf32, #tpu.memory_space<vmem>>, vector<4x2xf32>
    %c0_3 = arith.constant 0 : index
    %c0_4 = arith.constant 0 : index
    %2 = vector.load %arg6[%c0_3, %c0_4] : memref<32x4xf32, #tpu.memory_space<vmem>>, vector<32x4xf32>
    %3 = vector.extract_strided_slice %2 {offsets = [0, 0], sizes = [32, 1], strides = [1, 1]} : vector<32x4xf32> to vector<32x1xf32>
    %4 = vector.extract_strided_slice %2 {offsets = [0, 1], sizes = [32, 1], strides = [1, 1]} : vector<32x4xf32> to vector<32x1xf32>
    %5 = vector.extract_strided_slice %2 {offsets = [0, 2], sizes = [32, 1], strides = [1, 1]} : vector<32x4xf32> to vector<32x1xf32>
    %6 = vector.extract_strided_slice %2 {offsets = [0, 3], sizes = [1, 1], strides = [1, 1]} : vector<32x4xf32> to vector<1x1xf32>
    %c0_5 = arith.constant 0 : index
    %c0_6 = arith.constant 0 : index
    %7 = vector.load %arg3[%c0_5, %c0_6] : memref<32x16xf32, #tpu.memory_space<vmem>>, vector<32x16xf32>
    %cst = arith.constant dense<0.000000e+00> : vector<32x2xf32>
    %8 = tpu.matmul %7, %0, %cst {dimension_numbers = #tpu.dot_dimension_numbers<[1], [0], [0], [1], [0, 0, 1, 1], [], []>} : vector<32x16xf32>, vector<16x2xf32>, vector<32x2xf32> -> vector<32x2xf32>
    %c0_7 = arith.constant 0 : index
    %c0_8 = arith.constant 0 : index
    %9 = vector.load %arg4[%c0_7, %c0_8] : memref<32x4xf32, #tpu.memory_space<vmem>>, vector<32x4xf32>
    %cst_9 = arith.constant dense<0.000000e+00> : vector<32x2xf32>
    %10 = tpu.matmul %9, %1, %cst_9 {dimension_numbers = #tpu.dot_dimension_numbers<[1], [0], [0], [1], [0, 0, 1, 1], [], []>} : vector<32x4xf32>, vector<4x2xf32>, vector<32x2xf32> -> vector<32x2xf32>
    %11 = arith.addf %8, %10 : vector<32x2xf32>
    %12 = vector.broadcast %3 : vector<32x1xf32> to vector<32x2xf32>
    %13 = arith.addf %11, %12 : vector<32x2xf32>
    %cst_10 = arith.constant 0.000000e+00 : f32
    %14 = vector.broadcast %cst_10 : f32 to vector<32x2xf32>
    %15 = arith.maximumf %13, %14 : vector<32x2xf32>
    %c0_11 = arith.constant 0 : index
    %c0_12 = arith.constant 0 : index
    %16 = vector.load %arg5[%c0_11, %c0_12] : memref<32x32xf32, #tpu.memory_space<vmem>>, vector<32x32xf32>
    %cst_13 = arith.constant dense<0.000000e+00> : vector<32x2xf32>
    %17 = tpu.matmul %16, %15, %cst_13 {dimension_numbers = #tpu.dot_dimension_numbers<[1], [0], [0], [1], [0, 0, 1, 1], [], []>} : vector<32x32xf32>, vector<32x2xf32>, vector<32x2xf32> -> vector<32x2xf32>
    %18 = vector.broadcast %4 : vector<32x1xf32> to vector<32x2xf32>
    %19 = arith.addf %17, %18 : vector<32x2xf32>
    %cst_14 = arith.constant 0.000000e+00 : f32
    %20 = vector.broadcast %cst_14 : f32 to vector<32x2xf32>
    %21 = arith.maximumf %19, %20 : vector<32x2xf32>
    %22 = vector.broadcast %5 : vector<32x1xf32> to vector<32x2xf32>
    %23 = arith.mulf %21, %22 : vector<32x2xf32>
    %cst_15 = arith.constant dense<0.000000e+00> : vector<2xf32>
    %24 = vector.multi_reduction <add>, %23, %cst_15 [0] : vector<32x2xf32> to vector<2xf32>
    %25 = vector.shape_cast %24 : vector<2xf32> to vector<1x2xf32>
    %26 = vector.broadcast %6 : vector<1x1xf32> to vector<1x2xf32>
    %27 = arith.addf %25, %26 : vector<1x2xf32>
    %c0_16 = arith.constant 0 : index
    %c0_17 = arith.constant 0 : index
    %28 = vector.load %arg7[%c0_16, %c0_17] : memref<1x2xf32, #tpu.memory_space<vmem>>, vector<1x2xf32>
    tpu.vector_store %arg7[%c0_16, %c0_17], %27 {strides = array<i32>} : memref<1x2xf32, #tpu.memory_space<vmem>>, vector<1x2xf32>,
    return
  }
  func.func @transform_0(%arg0: i32) -> (i32, i32) {
    %c0_i32 = arith.constant 0 : i32
    %c0_i32_0 = arith.constant 0 : i32
    return %c0_i32, %arg0 : i32, i32
  }
  func.func @transform_1(%arg0: i32) -> (i32, i32) {
    %c0_i32 = arith.constant 0 : i32
    %c0_i32_0 = arith.constant 0 : i32
    return %c0_i32, %arg0 : i32, i32
  }
  func.func @transform_2(%arg0: i32) -> (i32, i32) {
    %c0_i32 = arith.constant 0 : i32
    %c0_i32_0 = arith.constant 0 : i32
    %c0_i32_1 = arith.constant 0 : i32
    return %c0_i32, %c0_i32_0 : i32, i32
  }
  func.func @transform_3(%arg0: i32) -> (i32, i32) {
    %c0_i32 = arith.constant 0 : i32
    %c0_i32_0 = arith.constant 0 : i32
    %c0_i32_1 = arith.constant 0 : i32
    return %c0_i32, %c0_i32_0 : i32, i32
  }
  func.func @transform_4(%arg0: i32) -> (i32, i32) {
    %c0_i32 = arith.constant 0 : i32
    %c0_i32_0 = arith.constant 0 : i32
    %c0_i32_1 = arith.constant 0 : i32
    return %c0_i32, %c0_i32_0 : i32, i32
  }
  func.func @transform_5(%arg0: i32) -> (i32, i32) {
    %c0_i32 = arith.constant 0 : i32
    %c0_i32_0 = arith.constant 0 : i32
    %c0_i32_1 = arith.constant 0 : i32
    return %c0_i32, %c0_i32_0 : i32, i32
  }
  func.func @transform_6(%arg0: i32) -> (i32, i32) {
    %c0_i32 = arith.constant 0 : i32
    %c0_i32_0 = arith.constant 0 : i32
    return %c0_i32, %arg0 : i32, i32
  }
}

</mosaic_0001>

<bundles_post_ra>
// kernel: tpu_custom_call.1
= control target key start
LH: loop header
LB: loop body
LE: loop exit
PB: predicated region body
PF: predicated region fallthrough
CT: control target
= control target key end

     0   :  { %vm52_vm0 = vcmask 1043456   ;;  %vm39_vm1 = vcmask 31744   ;;  %v560_v7 = vmov 0   ;;  %vm141_vm2 = vcmask 130048   ;;  %s681_s0 = inlined_call_operand.vmem [shape: f32[16,2], index: 0, kind: input, shape index: {}]   ;;  %s682_s1 = inlined_call_operand.vmem [shape: f32[4,2], index: 1, kind: input, shape index: {}]   ;;  %s683_s2 = inlined_call_operand.vmem [shape: f32[32,16], index: 2, kind: input, shape index: {}]   ;;  %s684_s3 = inlined_call_operand.vmem [shape: f32[32,4], index: 3, kind: input, shape index: {}]   ;;  %s685_s4 = inlined_call_operand.vmem [shape: f32[32,32], index: 4, kind: input, shape index: {}]   ;;  %s686_s5 = inlined_call_operand.vmem [shape: f32[32,4], index: 5, kind: input, shape index: {}]   ;;  %s687_s6 = inlined_call_operand.hbm [shape: f32[1,2], index: 6, kind: output, shape index: {}]  }
   0x1   :  { %v26_v0 = vld [vmem:[%s682_s1] sm:$0xf]  ;;  %v36_v2 = vld [vmem:[%s684_s3 + $0x8] sm:$0xff]  ;;  %v37_v5 = vld [vmem:[%s684_s3 + $0x10] sm:$0xff]  ;;  %529 = vset.pattern.permute.xlu0 %v560_v7  ;;  %530 = vset.pattern.permute.xlu1 %v560_v7 }
   0x2   :  { %v35_v1 = vld [vmem:[%s684_s3] sm:$0xff]  ;;  %476 = vmatprep.subr.msk.mxu0 %vm52_vm0, %v26_v0  ;;  %v25_v4 = vld [vmem:[%s681_s0 + $0x8] sm:$0xff]  ;;  %v38_v9 = vld [vmem:[%s684_s3 + $0x18] sm:$0xff] }
   0x3   :  { %478 = vmatprep.mubr.msk.f32.mxu0 %vm39_vm1, %v35_v1  ;;  %v24_v3 = vld [vmem:[%s681_s0] sm:$0xff]  ;;  %477 = vmatpush3.msk.msra.mxu0 %vm52_vm0, %v26_v0  ;;  %v29_v10 = vld [vmem:[%s686_s5 + $0x10] sm:$0xff] }
   0x4   :  { %v508_v6 = vpack.c.bf16 %v25_v4, %v24_v3  ;;  %479 = vmatmul.mubr.msk.f32.vlgmr.msra.gmra.mrb[0].mxu0 %vm39_vm1, %v36_v2  ;;  %v27_v8 = vld [vmem:[%s686_s5] sm:$0xff] }
   0x5   :  { %481 = vmatprep.mubr.msk.f32.mxu0 %vm39_vm1, %v37_v5  ;;  %v31_v11 = vld [vmem:[%s683_s2] sm:$0xff]  ;;  %241 = vperm.xlu0 %529, %v27_v8  }
   0x6   :  { %509 = vmatprep.subr.bf16.mxu0 %v508_v6 }
   0x7   :  { %511 = vmatpush3.bf16.msra.mxu0 %v508_v6 }
   0x8   :  { %11 = vsyncpa [#allocation3], 0  ;;  %251 = vperm.xlu1 %530, %v29_v10   ;;  %v28_v12 = vld [vmem:[%s686_s5 + $0x8] sm:$0xff]  ;;  %482 = vmatmul.mubr.msk.f32.gmra.mrb[2].mxu0 %vm39_vm1, %v38_v9  ;;  %v30_v13 = vld [vmem:[%s686_s5 + $0x18] sm:$0xff]  ;;  %vm287_vm3 = vcmask 261120   ;;  %v561_v18 = vmov 1  }
   0x9   :  { %488 = vmatprep.mubr.msk.f32.mxu0 %vm141_vm2, %v31_v11  ;;  %v32_v14 = vld [vmem:[%s683_s2 + $0x8] sm:$0xff]  ;;  %v33_v15 = vld [vmem:[%s683_s2 + $0x10] sm:$0xff]  ;;  %246 = vperm.xlu0 %529, %v28_v12   ;;  %v34_v16 = vld [vmem:[%s683_s2 + $0x18] sm:$0xff]  ;;  %v562_v19 = vmov 2   ;;  %v563_v20 = vmov 3   ;;  %vm409_vm4 = vcmask 15360  }
   0xa   :  { %v267_v17 = vld [vmem:[%s685_s4] sm:$0xff]  ;;  %v268_v39 = vld [vmem:[%s685_s4 + $0x8] sm:$0xff]  ;;  %v269_v40 = vld [vmem:[%s685_s4 + $0x10] sm:$0xff]  ;;  %vm428_vm5 = vcmask 8192  }
   0xb   :  { %502 = vmatprep.mubr.msk.f32.mxu1 %vm287_vm3, %v267_v17  ;;  %v270_v41 = vld [vmem:[%s685_s4 + $0x18] sm:$0xff]  ;;  %s564_s4 = smov [#allocation2]  }
   0xc   :  { %256 = vperm.xlu1 %530, %v30_v13   ;;  %489 = vmatmul.mubr.msk.f32.vlgmr.msra.gmra.mrb[0].mxu0 %vm141_vm2, %v32_v14  ;;  %s436_s30 = sshll.u32 %s564_s4, 4  ;;  %s437_s30 = int_to_ptr.vmem [resolvable:$true] %s436_s30 }
   0xd   :  { %491 = vmatprep.mubr.msk.f32.mxu0 %vm141_vm2, %v33_v15  ;;  %531 = vset.pattern.permute.xlu0 %v561_v18  ;;  %s536_s1 = scalar_lea.vmem %s437_s30, 16  ;;  %s540_s7 = scalar_lea.vmem %s437_s30, 32 }
   0xe   :  { %272 = vperm.xlu0 %531, %v27_v8   ;;  %p537_p0 = scmp.ne.s32.totalorder %s437_s30, %s536_s1  ;;  %p541_p1 = scmp.lt.s32.totalorder %s437_s30, %s437_s30 }
   0xf   :  { %p542_p2 = scmp.lt.s32.totalorder %s540_s7, %s536_s1 }
  0x10   :  { %492 = vmatmul.mubr.msk.f32.gmra.mrb[2].mxu0 %vm141_vm2, %v34_v16  ;;  %532 = vset.pattern.permute.xlu1 %v561_v18 }
  0x11   :  { %276 = vperm.xlu1 %532, %v28_v12   ;;  %p543_p3 = por %p542_p2, %p541_p1 }
  0x12   :  { %284 = vperm.xlu0 %531, %v30_v13  }
  0x13   :  { %p544_p4 = pnand %p543_p3, %p537_p0 }
  0x15   :  { %280 = vperm.xlu1 %532, %v29_v10  }
  0x16   :  { %534 = vset.pattern.permute.xlu0 %v562_v19 }
  0x17   :  { %394 = vperm.xlu0 %534, %v28_v12  }
  0x19   :  { %533 = vset.pattern.permute.xlu1 %v562_v19 }
  0x1a   :  { %390 = vperm.xlu1 %533, %v27_v8  }
  0x1b   :  { %535 = vset.pattern.permute.xlu0 %v563_v20 }
  0x1c   :  { %424 = vperm.xlu0 %535, %v27_v8  }
  0x1e   :  { %398 = vperm.xlu1 %533, %v29_v10  }
  0x22   :  { %402 = vperm.xlu1 %533, %v30_v13  }
  0x84   :  { %v242_v21 = vpop.permute.xlu0 %241 }
  0x87   :  { %v252_v22 = vpop.permute.xlu1 %251 }
  0x88   :  { %v247_v23 = vpop.permute.xlu0 %246 }
  0x8b   :  { %v257_v30 = vpop.permute.xlu1 %256 }
  0x8d   :  { %v273_v44 = vpop.permute.xlu0 %272 }
  0x90   :  { %v277_v42 = vpop.permute.xlu1 %276 }
  0x91   :  { %v285_v46 = vpop.permute.xlu0 %284 }
  0x94   :  { %v281_v43 = vpop.permute.xlu1 %280 }
  0x96   :  { %v395_v51 = vpop.permute.xlu0 %394 }
  0x99   :  { %v391_v45 = vpop.permute.xlu1 %390 }
  0x9b   :  { %v425_v14 = vpop.permute.xlu0 %424 }
  0x9d   :  { %v399_v52 = vpop.permute.xlu1 %398 }
  0xa1   :  { %v403_v1 = vpop.permute.xlu1 %402 }
  0xdf   :  { %v490_v24 = vpop.f32.mrb[0].mxu0 }
  0xe0   :  { %v260_v25 = vadd.f32 %v490_v24, %v247_v23  ;;  %v220_v26 = vpop.f32.mrb[1].mxu0 }
  0xe1   :  { %v259_v27 = vadd.f32 %v242_v21, %v220_v26 }
  0xe2   :  { %v264_v28 = vmax.f32 %v260_v25, 0.0 }
  0xe3   :  { %v263_v29 = vmax.f32 %v259_v27, 0.0  ;;  %v493_v31 = vpop.f32.mrb[2].mxu0 }
  0xe4   :  { %v262_v32 = vadd.f32 %v493_v31, %v257_v30  ;;  %v230_v33 = vpop.f32.mrb[3].mxu0 }
  0xe5   :  { %v261_v34 = vadd.f32 %v252_v22, %v230_v33  ;;  %v512_v35 = vpack.c.bf16 %v264_v28, %v263_v29 }
  0xe6   :  { %v266_v36 = vmax.f32 %v262_v32, 0.0 }
  0xe7   :  { %v265_v37 = vmax.f32 %v261_v34, 0.0  ;;  %513 = vmatprep.subr.bf16.mxu1 %v512_v35 }
  0xe8   :  { %515 = vmatpush3.bf16.msra.mxu1 %v512_v35 }
  0xe9   :  { %v516_v38 = vpack.c.bf16 %v266_v36, %v265_v37 }
  0xeb   :  { %517 = vmatprep.subr.bf16.mxu1 %v516_v38 }
  0xec   :  { %519 = vmatpush3.bf16.msra.mxu1 %v516_v38 }
  0xef   :  { %503 = vmatmul.mubr.msk.f32.vlgmr.msra.gmra.mrb[0].mxu1 %vm287_vm3, %v268_v39 }
  0xf0   :  { %505 = vmatprep.mubr.msk.f32.mxu1 %vm287_vm3, %v269_v40 }
  0xf3   :  { %506 = vmatmul.mubr.msk.f32.gmra.mrb[2].mxu1 %vm287_vm3, %v270_v41 }
 0x1c2   :  { %v504_v47 = vpop.f32.mrb[0].mxu1 }
 0x1c3   :  { %v372_v48 = vadd.f32 %v504_v47, %v277_v42  ;;  %v366_v49 = vpop.f32.mrb[1].mxu1 }
 0x1c4   :  { %v367_v50 = vadd.f32 %v366_v49, %v273_v44 }
 0x1c5   :  { %v386_v53 = vmax.f32 %v372_v48, 0.0 }
 0x1c6   :  { %v385_v54 = vmax.f32 %v367_v50, 0.0  ;;  %v507_v55 = vpop.f32.mrb[2].mxu1 }
 0x1c7   :  { %v406_v56 = vmul.f32 %v395_v51, %v386_v53  ;;  %v382_v57 = vadd.f32 %v507_v55, %v285_v46  ;;  %v376_v58 = vpop.f32.mrb[3].mxu1 }
 0x1c8   :  { %v405_v59 = vmul.f32 %v391_v45, %v385_v54  ;;  %v377_v60 = vadd.f32 %v376_v58, %v281_v43 }
 0x1c9   :  { %v411_v61 = vsel %vm409_vm4, %v406_v56, 0.0  ;;  %v388_v62 = vmax.f32 %v382_v57, 0.0 }
 0x1ca   :  { %v410_v63 = vsel %vm409_vm4, %v405_v59, 0.0  ;;  %v387_v0 = vmax.f32 %v377_v60, 0.0 }
 0x1cb   :  { %v412_v2 = vadd.f32 %v411_v61, %v410_v63  ;;  %v408_v3 = vmul.f32 %v403_v1, %v388_v62 }
 0x1cc   :  { %v407_v4 = vmul.f32 %v399_v52, %v387_v0 }
 0x1cd   :  { %v415_v7 = vsel %vm409_vm4, %v408_v3, 0.0 }
 0x1ce   :  { %v413_v5 = vsel %vm409_vm4, %v407_v4, 0.0 }
 0x1cf   :  { %v414_v6 = vadd.f32 %v413_v5, %v412_v2 }
 0x1d1   :  { %v416_v8 = vadd.f32 %v415_v7, %v414_v6 }
 0x1d3   :  { %v417_v9 = vrot.slane %v416_v8, 4 }
 0x1d5   :  { %v418_v10 = vadd.f32 %v417_v9, %v416_v8 }
 0x1d7   :  { %v419_v11 = vrot.slane %v418_v10, 2 }
 0x1d9   :  { %v420_v12 = vadd.f32 %v419_v11, %v418_v10 }
 0x1db   :  { %v421_v13 = vrot.slane %v420_v12, 1 }
 0x1dd   :  { %v422_v15 = vadd.f32 %v421_v13, %v420_v12 }
 0x1df   :  { %v427_v16 = vadd.f32 %v425_v14, %v422_v15 }
 0x1e1   :  { %429 = vst.msk [vmem:[#allocation2] sm:$0x1] %vm428_vm5, %v427_v16 }
 0x1e2   :  { %547 = shalt.err (!%p544_p4)
}
 0x1e3   :  { %s548_s10 = scalar_lea.hbm %s687_s6, 16 }
 0x1e4   :  { %p549_p5 = scmp.ne.s32.totalorder %s687_s6, %s548_s10  ;;  %p552_p6 = scmp.lt.u32.totalorder %s548_s10, %s687_s6 }
 0x1e6   :  { %p554_p7 = pnand %p552_p6, %p549_p5 }
 0x1e8   :  { %557 = shalt.err (!%p554_p7)
}
 0x1e9   :  { %439 = dma.vmem_to_hbm [thread:$0]  %s437_s30, 16, %s687_s6, [#allocation3]  }
 0x1ea   :  { %558 = dma.done.wait [#allocation3], 16  }
 0x1eb   :  { %559 = vsyncadd [#allocation3], 4294967280 }
 0x1ec   :  { %443 = vsyncpa [#allocation3], 1 }

</bundles_post_ra>
